<compile_context>
chip_gen: v7x
topology: tpu7x:2x2x1
jax: 0.10.0
libtpu: 0.0.40
codegen_flags: <defaults>
</compile_context>

<pallas_src>
import jax
import jax.numpy as jnp
from jax.experimental import pallas as pl
from jax.experimental.pallas import tpu as pltpu


def _coconet_kernel(xz_ref, wt_ref, b_ref, out_ref):
    """xz: (N, K), wt: (K, 2R), b: (1, 2R)  ->  out: (N, 2R)."""
    xz = xz_ref[...]                                   # (N, K)
    wt = wt_ref[...]                                   # (K, 2R)
    k_dim = wt_ref.shape[0]                            # static: p + q (= 6)
    acc = jnp.zeros(out_ref.shape, jnp.float32)
    # Unrolled K-step outer-product accumulation on the VPU (no MXU needed).
    for k in range(k_dim):
        acc = acc + xz[:, k:k + 1] * wt[k:k + 1, :]    # (N,1)*(1,2R) -> (N,2R)
    out_ref[...] = (acc + b_ref[...]).astype(out_ref.dtype)


def coconet_forward(X, Z, Wr, br, Wf, bf):
    """X: (N, p), Z: (N, q). Returns (r_out, f_out), each (num_roi, N)."""
    N, p = X.shape
    q = Z.shape[1]
    R = Wr.shape[0]

    XZ = jnp.concatenate([X, Z], axis=-1).astype(jnp.float32)        # (N, p+q)
    # Zero-pad Wr on the X columns so W_all acts on XZ directly.
    Wr_pad = jnp.concatenate(
        [jnp.zeros((R, p), Wr.dtype), Wr], axis=1)                   # (R, p+q)
    W_all = jnp.concatenate([Wr_pad, Wf], axis=0)                    # (2R, p+q)
    Wt_all = W_all.T.astype(jnp.float32)                             # (p+q, 2R)
    b_all = jnp.concatenate([br, bf]).reshape(1, 2 * R)              # (1, 2R)
    b_all = b_all.astype(jnp.float32)

    vmem = pl.BlockSpec(memory_space=pltpu.MemorySpace.VMEM)
    out = pl.pallas_call(
        _coconet_kernel,
        out_shape=jax.ShapeDtypeStruct((N, 2 * R), jnp.float32),
        in_specs=[vmem, vmem, vmem],
        out_specs=vmem,
    )(XZ, Wt_all, b_all)                                             # (N, 2R)

    r_out = out[:, :R].T                                             # (R, N)
    f_out = out[:, R:].T                                             # (R, N)
    return r_out, f_out


def make_params(key, p, q, num_roi):
    """Deterministic nn.Linear-style init (uniform in +-1/sqrt(fan_in))."""
    k1, k2, k3, k4 = jax.random.split(key, 4)
    lim_r = 1.0 / jnp.sqrt(q)
    lim_f = 1.0 / jnp.sqrt(p + q)
    Wr = jax.random.uniform(k1, (num_roi, q), jnp.float32, -lim_r, lim_r)
    br = jax.random.uniform(k2, (num_roi,), jnp.float32, -lim_r, lim_r)
    Wf = jax.random.uniform(k3, (num_roi, p + q), jnp.float32, -lim_f, lim_f)
    bf = jax.random.uniform(k4, (num_roi,), jnp.float32, -lim_f, lim_f)
    return Wr, br, Wf, bf


def reference_forward(X, Z, Wr, br, Wf, bf):
    XZ = jnp.concatenate([X, Z], axis=-1)
    r = Z @ Wr.T + br          # (N, R)
    f = XZ @ Wf.T + bf         # (N, R)
    return r.T, f.T            # (R, N) each, matching torch stack+squeeze


if __name__ == "__main__":
    p, q, num_roi = 1, 5, 148
    batch = 8

    key = jax.random.PRNGKey(0)
    kx, kz, kp = jax.random.split(key, 3)
    X = jax.random.normal(kx, (batch, p), jnp.float32)
    Z = jax.random.normal(kz, (batch, q), jnp.float32)
    Wr, br, Wf, bf = make_params(kp, p, q, num_roi)

    r_out, f_out = coconet_forward(X, Z, Wr, br, Wf, bf)
    jax.block_until_ready((r_out, f_out))

    r_ref, f_ref = reference_forward(X, Z, Wr, br, Wf, bf)
    assert r_out.shape == (num_roi, batch) and f_out.shape == (num_roi, batch)
    assert jnp.allclose(r_out, r_ref, atol=1e-5, rtol=1e-5)
    assert jnp.allclose(f_out, f_ref, atol=1e-5, rtol=1e-5)

    print("KERNEL_OK")
</pallas_src>

<mosaic_0001>
module attributes {stable_mosaic.version = 11 : i64} {
  func.func @_coconet_kernel(%arg0: memref<8x6xf32, #tpu.memory_space<vmem>>, %arg1: memref<6x296xf32, #tpu.memory_space<vmem>>, %arg2: memref<1x296xf32, #tpu.memory_space<vmem>>, %arg3: memref<8x296xf32, #tpu.memory_space<vmem>>) attributes {dimension_semantics = [], scalar_prefetch = 0 : i64, scratch_operands = 0 : i64, tpu.core_type = #tpu.core_type<tc>} {
    %c0 = arith.constant 0 : index
    %c0_0 = arith.constant 0 : index
    %0 = vector.load %arg0[%c0, %c0_0] : memref<8x6xf32, #tpu.memory_space<vmem>>, vector<8x6xf32>
    %c0_1 = arith.constant 0 : index
    %c0_2 = arith.constant 0 : index
    %1 = vector.load %arg1[%c0_1, %c0_2] : memref<6x296xf32, #tpu.memory_space<vmem>>, vector<6x296xf32>
    %cst = arith.constant 0.000000e+00 : f32
    %2 = vector.broadcast %cst : f32 to vector<8x296xf32>
    %3 = vector.extract_strided_slice %0 {offsets = [0, 0], sizes = [8, 1], strides = [1, 1]} : vector<8x6xf32> to vector<8x1xf32>
    %4 = vector.extract_strided_slice %1 {offsets = [0, 0], sizes = [1, 296], strides = [1, 1]} : vector<6x296xf32> to vector<1x296xf32>
    %5 = vector.broadcast %3 : vector<8x1xf32> to vector<8x296xf32>
    %6 = vector.broadcast %4 : vector<1x296xf32> to vector<8x296xf32>
    %7 = arith.mulf %5, %6 : vector<8x296xf32>
    %8 = arith.addf %2, %7 : vector<8x296xf32>
    %9 = vector.extract_strided_slice %0 {offsets = [0, 1], sizes = [8, 1], strides = [1, 1]} : vector<8x6xf32> to vector<8x1xf32>
    %10 = vector.extract_strided_slice %1 {offsets = [1, 0], sizes = [1, 296], strides = [1, 1]} : vector<6x296xf32> to vector<1x296xf32>
    %11 = vector.broadcast %9 : vector<8x1xf32> to vector<8x296xf32>
    %12 = vector.broadcast %10 : vector<1x296xf32> to vector<8x296xf32>
    %13 = arith.mulf %11, %12 : vector<8x296xf32>
    %14 = arith.addf %8, %13 : vector<8x296xf32>
    %15 = vector.extract_strided_slice %0 {offsets = [0, 2], sizes = [8, 1], strides = [1, 1]} : vector<8x6xf32> to vector<8x1xf32>
    %16 = vector.extract_strided_slice %1 {offsets = [2, 0], sizes = [1, 296], strides = [1, 1]} : vector<6x296xf32> to vector<1x296xf32>
    %17 = vector.broadcast %15 : vector<8x1xf32> to vector<8x296xf32>
    %18 = vector.broadcast %16 : vector<1x296xf32> to vector<8x296xf32>
    %19 = arith.mulf %17, %18 : vector<8x296xf32>
    %20 = arith.addf %14, %19 : vector<8x296xf32>
    %21 = vector.extract_strided_slice %0 {offsets = [0, 3], sizes = [8, 1], strides = [1, 1]} : vector<8x6xf32> to vector<8x1xf32>
    %22 = vector.extract_strided_slice %1 {offsets = [3, 0], sizes = [1, 296], strides = [1, 1]} : vector<6x296xf32> to vector<1x296xf32>
    %23 = vector.broadcast %21 : vector<8x1xf32> to vector<8x296xf32>
    %24 = vector.broadcast %22 : vector<1x296xf32> to vector<8x296xf32>
    %25 = arith.mulf %23, %24 : vector<8x296xf32>
    %26 = arith.addf %20, %25 : vector<8x296xf32>
    %27 = vector.extract_strided_slice %0 {offsets = [0, 4], sizes = [8, 1], strides = [1, 1]} : vector<8x6xf32> to vector<8x1xf32>
    %28 = vector.extract_strided_slice %1 {offsets = [4, 0], sizes = [1, 296], strides = [1, 1]} : vector<6x296xf32> to vector<1x296xf32>
    %29 = vector.broadcast %27 : vector<8x1xf32> to vector<8x296xf32>
    %30 = vector.broadcast %28 : vector<1x296xf32> to vector<8x296xf32>
    %31 = arith.mulf %29, %30 : vector<8x296xf32>
    %32 = arith.addf %26, %31 : vector<8x296xf32>
    %33 = vector.extract_strided_slice %0 {offsets = [0, 5], sizes = [8, 1], strides = [1, 1]} : vector<8x6xf32> to vector<8x1xf32>
    %34 = vector.extract_strided_slice %1 {offsets = [5, 0], sizes = [1, 296], strides = [1, 1]} : vector<6x296xf32> to vector<1x296xf32>
    %35 = vector.broadcast %33 : vector<8x1xf32> to vector<8x296xf32>
    %36 = vector.broadcast %34 : vector<1x296xf32> to vector<8x296xf32>
    %37 = arith.mulf %35, %36 : vector<8x296xf32>
    %38 = arith.addf %32, %37 : vector<8x296xf32>
    %c0_3 = arith.constant 0 : index
    %c0_4 = arith.constant 0 : index
    %39 = vector.load %arg2[%c0_3, %c0_4] : memref<1x296xf32, #tpu.memory_space<vmem>>, vector<1x296xf32>
    %40 = vector.broadcast %39 : vector<1x296xf32> to vector<8x296xf32>
    %41 = arith.addf %38, %40 : vector<8x296xf32>
    %c0_5 = arith.constant 0 : index
    %c0_6 = arith.constant 0 : index
    %42 = vector.load %arg3[%c0_5, %c0_6] : memref<8x296xf32, #tpu.memory_space<vmem>>, vector<8x296xf32>
    tpu.vector_store %arg3[%c0_5, %c0_6], %41 {strides = array<i32>} : memref<8x296xf32, #tpu.memory_space<vmem>>, vector<8x296xf32>,
    return
  }
}

</mosaic_0001>

<bundles_post_ra>
// kernel: tpu_custom_call.1
= control target key start
LH: loop header
LB: loop body
LE: loop exit
PB: predicated region body
PF: predicated region fallthrough
CT: control target
= control target key end

     0   :  { %8 = vsyncpa [#allocation3], 0  ;;  %s389_s0 = inlined_call_operand.hbm [shape: f32[8,6], index: 0, kind: input, shape index: {}]   ;;  %s390_s1 = inlined_call_operand.hbm [shape: f32[6,296], index: 1, kind: input, shape index: {}]   ;;  %s391_s2 = inlined_call_operand.vmem [shape: f32[1,296], index: 2, kind: input, shape index: {}]   ;;  %s392_s3 = inlined_call_operand.hbm [shape: f32[8,296], index: 3, kind: output, shape index: {}]  }
   0x1   :  { %9 = vsyncpa [#allocation6], 0 }
   0x2   :  { %10 = vsyncpa [#allocation4], 0  ;;  %s303_s12 = smov [#allocation2]   ;;  %s304_s14 = smov [#allocation5]  }
   0x3   :  { %s17_s13 = sshll.u32 %s303_s12, 4  ;;  %s27_s15 = sshll.u32 %s304_s14, 4  ;;  %s18_s13 = int_to_ptr.vmem [resolvable:$true] %s17_s13  ;;  %s28_s15 = int_to_ptr.vmem [resolvable:$true] %s27_s15 }
   0x4   :  { %s231_s18 = scalar_lea.hbm %s389_s0, 128 }
   0x5   :  { %p232_p0 = scmp.ne.s32.totalorder %s389_s0, %s231_s18  ;;  %p235_p1 = scmp.lt.u32.totalorder %s231_s18, %s389_s0 }
   0x7   :  { %p237_p2 = pnand %p235_p1, %p232_p0 }
   0x9   :  { %240 = shalt.err (!%p237_p2)
}
   0xa   :  { %s241_s23 = scalar_lea.vmem %s18_s13, 128  ;;  %p246_p4 = scmp.lt.s32.totalorder %s18_s13, %s18_s13 }
   0xb   :  { %p242_p3 = scmp.ne.s32.totalorder %s18_s13, %s241_s23  ;;  %p247_p5 = scmp.lt.s32.totalorder %s241_s23, %s241_s23 }
   0xd   :  { %p248_p6 = por %p247_p5, %p246_p4 }
   0xf   :  { %p249_p7 = pnand %p248_p6, %p242_p3 }
  0x11   :  { %252 = shalt.err (!%p249_p7)
}
  0x12   :  { %20 = dma.hbm_to_vmem [thread:$0]  %s389_s0, 128, %s18_s13, [#allocation3]  }
  0x13   :  { %s253_s28 = scalar_lea.hbm %s390_s1, 384 }
  0x14   :  { %p254_p8 = scmp.ne.s32.totalorder %s390_s1, %s253_s28  ;;  %p257_p9 = scmp.lt.u32.totalorder %s253_s28, %s390_s1 }
  0x16   :  { %p259_p10 = pnand %p257_p9, %p254_p8 }
  0x18   :  { %262 = shalt.err (!%p259_p10)
}
  0x19   :  { %s263_s6 = scalar_lea.vmem %s28_s15, 384  ;;  %p268_p12 = scmp.lt.s32.totalorder %s28_s15, %s28_s15 }
  0x1a   :  { %p264_p11 = scmp.ne.s32.totalorder %s28_s15, %s263_s6  ;;  %p269_p13 = scmp.lt.s32.totalorder %s263_s6, %s263_s6 }
  0x1c   :  { %p270_p0 = por %p269_p13, %p268_p12 }
  0x1e   :  { %p271_p1 = pnand %p270_p0, %p264_p11 }
  0x20   :  { %274 = shalt.err (!%p271_p1)
}
  0x21   :  { %30 = dma.hbm_to_vmem [thread:$0]  %s390_s1, 384, %s28_s15, [#allocation6]  }
  0x22   :  { %297 = dma.done.wait [#allocation3], 128  }
  0x23   :  { %298 = vsyncadd [#allocation3], 4294967168 }
  0x24   :  { %299 = dma.done.wait [#allocation6], 384  }
  0x25   :  { %300 = vsyncadd [#allocation6], 4294966912  ;;  %v305_v0 = vmov 0   ;;  %v306_v1 = vmov 2   ;;  %v39_v2 = vld [vmem:[#allocation2] sm:$0xff]  ;;  %v307_v3 = vmov 1   ;;  %v48_v7 = vlaneseq }
  0x26   :  { %225 = vset.pattern.permute.xlu0 %v305_v0  ;;  %227 = vset.pattern.permute.xlu1 %v306_v1  ;;  %v308_v4 = vmov 3   ;;  %v309_v5 = vmov 4   ;;  %v310_v6 = vmov 5   ;;  %v40_v10 = vld [vmem:[#allocation5] sm:$0x3f]  ;;  %vm198_vm0 = vcmask 326656  }
  0x27   :  { %45 = vperm.xlu0 %225, %v39_v2   ;;  %89 = vperm.xlu1 %227, %v39_v2   ;;  %v49_v8 = vshrl.u32 %v48_v7, 7  ;;  %v41_v11 = vld [vmem:[#allocation5 + $0x8] sm:$0x3f]  ;;  %v42_v13 = vld [vmem:[#allocation5 + $0x10] sm:$0x3f] }
  0x28   :  { %v176_v59 = vld [vmem:[%s391_s2] sm:$0x7]  ;;  %s311_s2 = smov [#allocation7]  }
  0x29   :  { %v356_v9 = vsub.s32 0, %v49_v8  ;;  %v358_v12 = vsub.s32 1, %v49_v8  ;;  %v360_v14 = vsub.s32 2, %v49_v8  ;;  %v116_v17 = vsub.s32 3, %v49_v8  ;;  %s206_s9 = sshll.u32 %s311_s2, 4  ;;  %s207_s9 = int_to_ptr.vmem [resolvable:$true] %s206_s9 }
  0x2a   :  { %v138_v18 = vsub.s32 4, %v49_v8  ;;  %v160_v28 = vsub.s32 5, %v49_v8  ;;  %s275_s10 = scalar_lea.vmem %s207_s9, 384  ;;  %p280_p3 = scmp.lt.s32.totalorder %s207_s9, %s207_s9 }
  0x2b   :  { %226 = vset.pattern.permute.xlu0 %v307_v3  ;;  %228 = vset.pattern.permute.xlu1 %v308_v4  ;;  %v51_v19 = vrot.slane %v40_v10, %v356_v9  ;;  %v55_v20 = vrot.slane %v41_v11, %v356_v9  ;;  %v59_v21 = vrot.slane %v42_v13, %v356_v9  ;;  %p276_p2 = scmp.ne.s32.totalorder %s207_s9, %s275_s10  ;;  %p281_p4 = scmp.lt.s32.totalorder %s275_s10, %s275_s10 }
  0x2c   :  { %67 = vperm.xlu0 %226, %v39_v2   ;;  %111 = vperm.xlu1 %228, %v39_v2   ;;  %v73_v22 = vrot.slane %v40_v10, %v358_v12  ;;  %v77_v23 = vrot.slane %v41_v11, %v358_v12  ;;  %v81_v24 = vrot.slane %v42_v13, %v358_v12 }
  0x2d   :  { %v95_v25 = vrot.slane %v40_v10, %v360_v14  ;;  %v99_v26 = vrot.slane %v41_v11, %v360_v14  ;;  %v103_v27 = vrot.slane %v42_v13, %v360_v14  ;;  %v117_v29 = vrot.slane %v40_v10, %v116_v17  ;;  %p282_p5 = por %p281_p4, %p280_p3 }
  0x2e   :  { %v121_v30 = vrot.slane %v41_v11, %v116_v17  ;;  %v125_v31 = vrot.slane %v42_v13, %v116_v17  ;;  %v139_v32 = vrot.slane %v40_v10, %v138_v18  ;;  %v143_v37 = vrot.slane %v41_v11, %v138_v18 }
  0x2f   :  { %v147_v38 = vrot.slane %v42_v13, %v138_v18  ;;  %v161_v45 = vrot.slane %v40_v10, %v160_v28  ;;  %v165_v46 = vrot.slane %v41_v11, %v160_v28  ;;  %v169_v53 = vrot.slane %v42_v13, %v160_v28  ;;  %p283_p6 = pnand %p282_p5, %p276_p2 }
  0x30   :  { %229 = vset.pattern.permute.xlu1 %v309_v5  ;;  %230 = vset.pattern.permute.xlu0 %v310_v6  ;;  %v181_v5 = vrot.slane %v176_v59, %v356_v9  ;;  %v185_v6 = vrot.slane %v176_v59, %v358_v12  ;;  %v189_v13 = vrot.slane %v176_v59, %v360_v14 }
  0x31   :  { %133 = vperm.xlu1 %229, %v39_v2   ;;  %155 = vperm.xlu0 %230, %v39_v2  }
  0xa6   :  { %v46_v15 = vpop.permute.xlu0 %45  ;;  %v90_v16 = vpop.permute.xlu1 %89 }
  0xa7   :  { %v60_v33 = vmul.f32 %v51_v19, %v46_v15  ;;  %v61_v34 = vmul.f32 %v55_v20, %v46_v15  ;;  %v62_v39 = vmul.f32 %v59_v21, %v46_v15  ;;  %v104_v43 = vmul.f32 %v95_v25, %v90_v16 }
  0xa8   :  { %v105_v44 = vmul.f32 %v99_v26, %v90_v16  ;;  %v106_v47 = vmul.f32 %v103_v27, %v90_v16 }
  0xab   :  { %v68_v35 = vpop.permute.xlu0 %67  ;;  %v112_v36 = vpop.permute.xlu1 %111 }
  0xac   :  { %v82_v40 = vmul.f32 %v73_v22, %v68_v35  ;;  %v83_v41 = vmul.f32 %v77_v23, %v68_v35  ;;  %v84_v42 = vmul.f32 %v81_v24, %v68_v35  ;;  %v126_v51 = vmul.f32 %v117_v29, %v112_v36 }
  0xad   :  { %v127_v52 = vmul.f32 %v121_v30, %v112_v36  ;;  %v128_v57 = vmul.f32 %v125_v31, %v112_v36 }
  0xae   :  { %v85_v48 = vadd.f32 %v82_v40, %v60_v33  ;;  %v86_v49 = vadd.f32 %v83_v41, %v61_v34  ;;  %v87_v50 = vadd.f32 %v84_v42, %v62_v39 }
  0xb0   :  { %v107_v54 = vadd.f32 %v104_v43, %v85_v48  ;;  %v108_v55 = vadd.f32 %v105_v44, %v86_v49  ;;  %v109_v56 = vadd.f32 %v106_v47, %v87_v50  ;;  %v134_v58 = vpop.permute.xlu1 %133  ;;  %v156_v60 = vpop.permute.xlu0 %155 }
  0xb1   :  { %v148_v61 = vmul.f32 %v139_v32, %v134_v58  ;;  %v149_v62 = vmul.f32 %v143_v37, %v134_v58  ;;  %v150_v63 = vmul.f32 %v147_v38, %v134_v58  ;;  %v170_v0 = vmul.f32 %v161_v45, %v156_v60 }
  0xb2   :  { %v129_v1 = vadd.f32 %v126_v51, %v107_v54  ;;  %v130_v2 = vadd.f32 %v127_v52, %v108_v55  ;;  %v131_v3 = vadd.f32 %v128_v57, %v109_v56  ;;  %v171_v4 = vmul.f32 %v165_v46, %v156_v60 }
  0xb3   :  { %v172_v7 = vmul.f32 %v169_v53, %v156_v60 }
  0xb4   :  { %v151_v8 = vadd.f32 %v148_v61, %v129_v1  ;;  %v152_v10 = vadd.f32 %v149_v62, %v130_v2  ;;  %v153_v11 = vadd.f32 %v150_v63, %v131_v3 }
  0xb6   :  { %v173_v15 = vadd.f32 %v170_v0, %v151_v8  ;;  %v174_v16 = vadd.f32 %v171_v4, %v152_v10  ;;  %v175_v17 = vadd.f32 %v172_v7, %v153_v11 }
  0xb8   :  { %v193_v18 = vadd.f32 %v181_v5, %v173_v15  ;;  %v194_v19 = vadd.f32 %v185_v6, %v174_v16  ;;  %v195_v20 = vadd.f32 %v189_v13, %v175_v17 }
  0xba   :  { %196 = vst [vmem:[#allocation7] sm:$0xff] %v193_v18  ;;  %197 = vst [vmem:[#allocation7 + $0x8] sm:$0xff] %v194_v19 }
  0xbb   :  { %199 = vst.msk [vmem:[#allocation7 + $0x10] sm:$0xff] %vm198_vm0, %v195_v20 }
  0xbc   :  { %286 = shalt.err (!%p283_p6)
}
  0xbd   :  { %s287_s13 = scalar_lea.hbm %s392_s3, 384 }
  0xbe   :  { %p288_p7 = scmp.ne.s32.totalorder %s392_s3, %s287_s13  ;;  %p291_p8 = scmp.lt.u32.totalorder %s287_s13, %s392_s3 }
  0xc0   :  { %p293_p9 = pnand %p291_p8, %p288_p7 }
  0xc2   :  { %296 = shalt.err (!%p293_p9)
}
  0xc3   :  { %209 = dma.vmem_to_hbm [thread:$0]  %s207_s9, 384, %s392_s3, [#allocation4]  }
  0xc4   :  { %301 = dma.done.wait [#allocation4], 384  }
  0xc5   :  { %302 = vsyncadd [#allocation4], 4294966912 }
  0xc6   :  { %213 = vsyncpa [#allocation3], 1 }
  0xc7   :  { %214 = vsyncpa [#allocation6], 1 }
  0xc8   :  { %215 = vsyncpa [#allocation4], 1 }

</bundles_post_ra>
